<compile_context>
chip_gen: v7x
topology: tpu7x:2x2x1
jax: 0.10.0
libtpu: 0.0.40
codegen_flags: <defaults>
</compile_context>

<pallas_src>
import functools
import math

import jax
import jax.numpy as jnp
from jax import lax
from jax.experimental import pallas as pl
from jax.experimental.pallas import tpu as pltpu


def _mha_kernel(x_ref, m_ref, wv_ref, wpT_ref, bp_ref, o_ref,
                *, batch, seq, n_heads, head_dim):
    # x_ref:   (B*N, F)    whole batch as one slab
    # m_ref:   (F, H*F)    per-head Wq_h @ Wk_h^T / sqrt(E), heads stacked along lanes
    # wv_ref:  (F, H*E)    value projections, heads stacked along lanes
    # wpT_ref: (H*E, F)    output projection, pre-transposed
    # bp_ref:  (1, F)      output projection bias
    # o_ref:   (B*N, F)
    B, N, H, E = batch, seq, n_heads, head_dim
    x2 = x_ref[...]                                   # (B*N, F)
    F = x2.shape[-1]
    HE = H * E

    # One MXU push each for the fused "query-side" (scale already folded in) and value projs.
    xm = jnp.dot(x2, m_ref[...], preferred_element_type=jnp.float32)   # (B*N, H*F)
    xv = jnp.dot(x2, wv_ref[...], preferred_element_type=jnp.float32)  # (B*N, H*E)

    x3 = x2.reshape(B, N, F)                          # leading-dim split: cheap

    # Per-head scores, batched over the batch dim; stack head blocks along sublanes.
    score_blocks = []
    for h in range(H):                                # static unroll; H is small
        xm_h = xm[:, h * F:(h + 1) * F].reshape(B, N, F)
        s_h = lax.dot_general(                        # (B, N, N): x_b M_h x_b^T
            xm_h, x3, (((2,), (2,)), ((0,), (0,))),
            preferred_element_type=jnp.float32)
        score_blocks.append(s_h)
    scores = jnp.concatenate(score_blocks, axis=1)    # (B, H*N, N), sublane-stacked

    # Mask: keep j >= i within each N-block (reproduces the module's ~triu; NOT causal).
    row = lax.broadcasted_iota(jnp.int32, (B, H * N, N), 1)
    col = lax.broadcasted_iota(jnp.int32, (B, H * N, N), 2)
    keep = col >= (row % N)                           # diagonal always kept -> no NaN rows
    scores = jnp.where(keep, scores, -jnp.inf)

    # One numerically-stable softmax for all B*H heads at once.
    m = jnp.max(scores, axis=-1, keepdims=True)
    p = jnp.exp(scores - m)
    denom = jnp.sum(p, axis=-1, keepdims=True)
    attn = p * pl.reciprocal(denom, approx=True)      # EUP vrcp (slot otherwise idle)

    # attn @ V per head (sublane slices of attn, lane slices of xv), then concat heads.
    head_outs = []
    for h in range(H):
        a_h = attn[:, h * N:(h + 1) * N, :]           # (B, N, N) sublane slice (tile-aligned)
        v_h = xv[:, h * E:(h + 1) * E].reshape(B, N, E)
        o_h = lax.dot_general(                        # (B, N, E)
            a_h, v_h, (((2,), (1,)), ((0,), (0,))),
            preferred_element_type=jnp.float32)
        head_outs.append(o_h)
    cat = jnp.concatenate(head_outs, axis=-1).reshape(B * N, HE)        # (B*N, H*E)

    # Single output-projection push + one bias add + one store for the whole slab.
    out = jnp.dot(cat, wpT_ref[...], preferred_element_type=jnp.float32) + bp_ref[...]
    o_ref[...] = out.astype(o_ref.dtype)


def multi_head_attention(x, wk, wq, wv, w_proj, b_proj):
    """x: [B, N, F]; wk/wq/wv: [H, F, E]; w_proj: [F, H*E]; b_proj: [F] -> [B, N, F]."""
    B, N, F = x.shape
    H, _, E = wk.shape
    HE = H * E
    inv_sqrt_e = 1.0 / math.sqrt(float(E))

    # Fold Wq_h @ Wk_h^T / sqrt(E) into one (F, F) matrix per head; stack heads along lanes.
    m_heads = jnp.einsum("hfe,hge->hfg", wq, wk) * inv_sqrt_e           # (H, F, F)
    m_stack = jnp.transpose(m_heads, (1, 0, 2)).reshape(F, H * F)       # (F, H*F)
    wv_stack = jnp.transpose(wv, (1, 0, 2)).reshape(F, HE)              # (F, H*E)
    w_projT = w_proj.T                                                  # (H*E, F)
    b2 = b_proj.reshape(1, F)
    x2 = x.reshape(B * N, F)                                            # fold batch into rows

    kernel = functools.partial(_mha_kernel, batch=B, seq=N, n_heads=H, head_dim=E)

    out2 = pl.pallas_call(
        kernel,
        out_shape=jax.ShapeDtypeStruct((B * N, F), x.dtype),
        # Collapsed grid: a single step processes the whole batch (best on 1-TC v5e/v6e;
        # on v7x a grid=(B,) "parallel" split could be benchmarked once shapes grow).
        grid=(1,),
        in_specs=[
            pl.BlockSpec((B * N, F), lambda i: (0, 0)),
            pl.BlockSpec((F, H * F), lambda i: (0, 0)),
            pl.BlockSpec((F, HE), lambda i: (0, 0)),
            pl.BlockSpec((HE, F), lambda i: (0, 0)),
            pl.BlockSpec((1, F), lambda i: (0, 0)),
        ],
        out_specs=pl.BlockSpec((B * N, F), lambda i: (0, 0)),
        compiler_params=pltpu.CompilerParams(dimension_semantics=("arbitrary",)),
    )(x2, m_stack, wv_stack, w_projT, b2)
    return out2.reshape(B, N, F)


def _reference(x, wk, wq, wv, w_proj, b_proj):
    # pure-JAX reference for sanity checking
    H, F, E = wk.shape
    B, N, _ = x.shape
    k = jnp.einsum("bnf,hfe->bhne", x, wk)
    q = jnp.einsum("bnf,hfe->bhne", x, wq)
    v = jnp.einsum("bnf,hfe->bhne", x, wv)
    scores = jnp.einsum("bhie,bhje->bhij", q, k) / jnp.sqrt(float(E))
    keep = jnp.triu(jnp.ones((N, N), dtype=bool))
    scores = jnp.where(keep[None, None], scores, -jnp.inf)
    attn = jax.nn.softmax(scores, axis=-1)
    o = jnp.einsum("bhij,bhje->bhie", attn, v)               # (B, H, N, E)
    o = jnp.transpose(o, (0, 2, 1, 3)).reshape(B, N, H * E)  # concat heads
    return o @ w_proj.T + b_proj


def _xavier_uniform(key, shape):
    fan_in, fan_out = shape[-2], shape[-1]
    bound = math.sqrt(6.0 / (fan_in + fan_out))
    return jax.random.uniform(key, shape, jnp.float32, -bound, bound)


if __name__ == "__main__":
    # shapes consistent with the module: input_size=32, n_heads=4 -> head_dim=8, seq=8, batch=2
    B, N, F, H = 2, 8, 32, 4
    E = F // H

    root = jax.random.PRNGKey(0)
    kx, kk, kq, kv, kw, kb = jax.random.split(root, 6)

    x = jax.random.normal(kx, (B, N, F), jnp.float32)
    wk = _xavier_uniform(kk, (H, F, E))
    wq = _xavier_uniform(kq, (H, F, E))
    wv = _xavier_uniform(kv, (H, F, E))
    # nn.Linear(H*E, F): weight [F, H*E], bias [F]
    lim = 1.0 / math.sqrt(H * E)
    w_proj = jax.random.uniform(kw, (F, H * E), jnp.float32, -lim, lim)
    b_proj = jax.random.uniform(kb, (F,), jnp.float32, -lim, lim)

    out = multi_head_attention(x, wk, wq, wv, w_proj, b_proj)
    out = jax.block_until_ready(out)

    ref = _reference(x, wk, wq, wv, w_proj, b_proj)
    assert out.shape == (B, N, F)
    # tolerance loosened slightly for the approx (EUP) reciprocal + the WqWk^T reassociation
    assert jnp.allclose(out, ref, atol=3e-3, rtol=3e-3)

    print("KERNEL_OK")
</pallas_src>

<mosaic_0001>
module attributes {stable_mosaic.version = 11 : i64} {
  func.func @_mha_kernel(%arg0: i32, %arg1: memref<16x32xf32, #tpu.memory_space<vmem>>, %arg2: memref<32x128xf32, #tpu.memory_space<vmem>>, %arg3: memref<32x32xf32, #tpu.memory_space<vmem>>, %arg4: memref<32x32xf32, #tpu.memory_space<vmem>>, %arg5: memref<1x32xf32, #tpu.memory_space<vmem>>, %arg6: memref<16x32xf32, #tpu.memory_space<vmem>>) attributes {dimension_semantics = [#tpu.dimension_semantics<arbitrary>], iteration_bounds = array<i64: 1>, scalar_prefetch = 0 : i64, scratch_operands = 0 : i64, tpu.core_type = #tpu.core_type<tc>, window_params = [{pipeline_mode = #tpu.pipeline_mode<synchronous>, transform_indices = @transform_0, window_bounds = array<i64: 16, 32>}, {pipeline_mode = #tpu.pipeline_mode<synchronous>, transform_indices = @transform_1, window_bounds = array<i64: 32, 128>}, {pipeline_mode = #tpu.pipeline_mode<synchronous>, transform_indices = @transform_2, window_bounds = array<i64: 32, 32>}, {pipeline_mode = #tpu.pipeline_mode<synchronous>, transform_indices = @transform_3, window_bounds = array<i64: 32, 32>}, {pipeline_mode = #tpu.pipeline_mode<synchronous>, transform_indices = @transform_4, window_bounds = array<i64: 1, 32>}, {pipeline_mode = #tpu.pipeline_mode<synchronous>, transform_indices = @transform_5, window_bounds = array<i64: 16, 32>}]} {
    %c0 = arith.constant 0 : index
    %c0_0 = arith.constant 0 : index
    %0 = vector.load %arg1[%c0, %c0_0] : memref<16x32xf32, #tpu.memory_space<vmem>>, vector<16x32xf32>
    %c0_1 = arith.constant 0 : index
    %c0_2 = arith.constant 0 : index
    %1 = vector.load %arg2[%c0_1, %c0_2] : memref<32x128xf32, #tpu.memory_space<vmem>>, vector<32x128xf32>
    %cst = arith.constant dense<0.000000e+00> : vector<16x128xf32>
    %2 = tpu.matmul %0, %1, %cst {dimension_numbers = #tpu.dot_dimension_numbers<[1], [0], [0], [1], [0, 0, 1, 1], [], []>} : vector<16x32xf32>, vector<32x128xf32>, vector<16x128xf32> -> vector<16x128xf32>
    %c0_3 = arith.constant 0 : index
    %c0_4 = arith.constant 0 : index
    %3 = vector.load %arg3[%c0_3, %c0_4] : memref<32x32xf32, #tpu.memory_space<vmem>>, vector<32x32xf32>
    %cst_5 = arith.constant dense<0.000000e+00> : vector<16x32xf32>
    %4 = tpu.matmul %0, %3, %cst_5 {dimension_numbers = #tpu.dot_dimension_numbers<[1], [0], [0], [1], [0, 0, 1, 1], [], []>} : vector<16x32xf32>, vector<32x32xf32>, vector<16x32xf32> -> vector<16x32xf32>
    %5 = vector.shape_cast %0 : vector<16x32xf32> to vector<2x8x32xf32>
    %6 = vector.extract_strided_slice %2 {offsets = [0, 0], sizes = [16, 32], strides = [1, 1]} : vector<16x128xf32> to vector<16x32xf32>
    %7 = vector.shape_cast %6 : vector<16x32xf32> to vector<2x8x32xf32>
    %cst_6 = arith.constant dense<0.000000e+00> : vector<2x8x8xf32>
    %8 = tpu.matmul %7, %5, %cst_6 {dimension_numbers = #tpu.dot_dimension_numbers<[2], [2], [1], [1], [0, 0, 0, 1, 1, 1], [0], [0]>} : vector<2x8x32xf32>, vector<2x8x32xf32>, vector<2x8x8xf32> -> vector<2x8x8xf32>
    %9 = vector.extract_strided_slice %2 {offsets = [0, 32], sizes = [16, 32], strides = [1, 1]} : vector<16x128xf32> to vector<16x32xf32>
    %10 = vector.shape_cast %9 : vector<16x32xf32> to vector<2x8x32xf32>
    %cst_7 = arith.constant dense<0.000000e+00> : vector<2x8x8xf32>
    %11 = tpu.matmul %10, %5, %cst_7 {dimension_numbers = #tpu.dot_dimension_numbers<[2], [2], [1], [1], [0, 0, 0, 1, 1, 1], [0], [0]>} : vector<2x8x32xf32>, vector<2x8x32xf32>, vector<2x8x8xf32> -> vector<2x8x8xf32>
    %12 = vector.extract_strided_slice %2 {offsets = [0, 64], sizes = [16, 32], strides = [1, 1]} : vector<16x128xf32> to vector<16x32xf32>
    %13 = vector.shape_cast %12 : vector<16x32xf32> to vector<2x8x32xf32>
    %cst_8 = arith.constant dense<0.000000e+00> : vector<2x8x8xf32>
    %14 = tpu.matmul %13, %5, %cst_8 {dimension_numbers = #tpu.dot_dimension_numbers<[2], [2], [1], [1], [0, 0, 0, 1, 1, 1], [0], [0]>} : vector<2x8x32xf32>, vector<2x8x32xf32>, vector<2x8x8xf32> -> vector<2x8x8xf32>
    %15 = vector.extract_strided_slice %2 {offsets = [0, 96], sizes = [16, 32], strides = [1, 1]} : vector<16x128xf32> to vector<16x32xf32>
    %16 = vector.shape_cast %15 : vector<16x32xf32> to vector<2x8x32xf32>
    %cst_9 = arith.constant dense<0.000000e+00> : vector<2x8x8xf32>
    %17 = tpu.matmul %16, %5, %cst_9 {dimension_numbers = #tpu.dot_dimension_numbers<[2], [2], [1], [1], [0, 0, 0, 1, 1, 1], [0], [0]>} : vector<2x8x32xf32>, vector<2x8x32xf32>, vector<2x8x8xf32> -> vector<2x8x8xf32>
    %18 = tpu.concatenate %8, %11, %14, %17 in 1 : vector<2x8x8xf32>, vector<2x8x8xf32>, vector<2x8x8xf32>, vector<2x8x8xf32> -> vector<2x32x8xf32>
    %19 = tpu.iota {dimensions = array<i32: 1>} : vector<2x32x8xi32>
    %20 = tpu.iota {dimensions = array<i32: 2>} : vector<2x32x8xi32>
    %c8_i32 = arith.constant 8 : i32
    %c0_i32 = arith.constant 0 : i32
    %21 = arith.cmpi eq, %c8_i32, %c0_i32 : i32
    %c1_i32 = arith.constant 1 : i32
    %22 = arith.select %21, %c1_i32, %c8_i32 : i32
    %23 = vector.broadcast %22 : i32 to vector<2x32x8xi32>
    %24 = arith.remsi %19, %23 : vector<2x32x8xi32>
    %c0_i32_10 = arith.constant 0 : i32
    %25 = vector.broadcast %c0_i32_10 : i32 to vector<2x32x8xi32>
    %26 = arith.cmpi ne, %24, %25 : vector<2x32x8xi32>
    %c0_i32_11 = arith.constant 0 : i32
    %27 = vector.broadcast %c0_i32_11 : i32 to vector<2x32x8xi32>
    %28 = arith.cmpi slt, %24, %27 : vector<2x32x8xi32>
    %c0_i32_12 = arith.constant 0 : i32
    %29 = arith.cmpi slt, %22, %c0_i32_12 : i32
    %30 = vector.broadcast %29 : i1 to vector<2x32x8xi1>
    %31 = vector.broadcast %30 : vector<2x32x8xi1> to vector<2x32x8xi1>
    %32 = arith.xori %28, %31 : vector<2x32x8xi1>
    %33 = arith.andi %32, %26 : vector<2x32x8xi1>
    %34 = vector.broadcast %22 : i32 to vector<2x32x8xi32>
    %35 = arith.addi %24, %34 : vector<2x32x8xi32>
    %36 = arith.select %33, %35, %24 : vector<2x32x8xi1>, vector<2x32x8xi32>
    %37 = arith.cmpi sge, %20, %36 : vector<2x32x8xi32>
    %cst_13 = arith.constant 0xFF800000 : f32
    %38 = vector.broadcast %cst_13 : f32 to vector<2x32x8xf32>
    %39 = arith.select %37, %18, %38 : vector<2x32x8xi1>, vector<2x32x8xf32>
    %cst_14 = arith.constant dense<0xFF800000> : vector<2x32xf32>
    %40 = vector.multi_reduction <maximumf>, %39, %cst_14 [2] : vector<2x32x8xf32> to vector<2x32xf32>
    %41 = vector.shape_cast %40 : vector<2x32xf32> to vector<2x32x1xf32>
    %42 = vector.broadcast %41 : vector<2x32x1xf32> to vector<2x32x8xf32>
    %43 = arith.subf %39, %42 : vector<2x32x8xf32>
    %44 = math.exp %43 : vector<2x32x8xf32>
    %cst_15 = arith.constant dense<0.000000e+00> : vector<2x32xf32>
    %45 = vector.multi_reduction <add>, %44, %cst_15 [2] : vector<2x32x8xf32> to vector<2x32xf32>
    %46 = vector.shape_cast %45 : vector<2x32xf32> to vector<2x32x1xf32>
    %47 = tpu.reciprocal %46 {approx = true} : vector<2x32x1xf32> -> vector<2x32x1xf32>
    %48 = vector.broadcast %47 : vector<2x32x1xf32> to vector<2x32x8xf32>
    %49 = arith.mulf %44, %48 : vector<2x32x8xf32>
    %50 = vector.extract_strided_slice %49 {offsets = [0, 0, 0], sizes = [2, 8, 8], strides = [1, 1, 1]} : vector<2x32x8xf32> to vector<2x8x8xf32>
    %51 = vector.extract_strided_slice %4 {offsets = [0, 0], sizes = [16, 8], strides = [1, 1]} : vector<16x32xf32> to vector<16x8xf32>
    %52 = vector.shape_cast %51 : vector<16x8xf32> to vector<2x8x8xf32>
    %cst_16 = arith.constant dense<0.000000e+00> : vector<2x8x8xf32>
    %53 = tpu.matmul %50, %52, %cst_16 {dimension_numbers = #tpu.dot_dimension_numbers<[2], [1], [1], [2], [0, 0, 0, 1, 1, 2], [0], [0]>} : vector<2x8x8xf32>, vector<2x8x8xf32>, vector<2x8x8xf32> -> vector<2x8x8xf32>
    %54 = vector.extract_strided_slice %49 {offsets = [0, 8, 0], sizes = [2, 8, 8], strides = [1, 1, 1]} : vector<2x32x8xf32> to vector<2x8x8xf32>
    %55 = vector.extract_strided_slice %4 {offsets = [0, 8], sizes = [16, 8], strides = [1, 1]} : vector<16x32xf32> to vector<16x8xf32>
    %56 = vector.shape_cast %55 : vector<16x8xf32> to vector<2x8x8xf32>
    %cst_17 = arith.constant dense<0.000000e+00> : vector<2x8x8xf32>
    %57 = tpu.matmul %54, %56, %cst_17 {dimension_numbers = #tpu.dot_dimension_numbers<[2], [1], [1], [2], [0, 0, 0, 1, 1, 2], [0], [0]>} : vector<2x8x8xf32>, vector<2x8x8xf32>, vector<2x8x8xf32> -> vector<2x8x8xf32>
    %58 = vector.extract_strided_slice %49 {offsets = [0, 16, 0], sizes = [2, 8, 8], strides = [1, 1, 1]} : vector<2x32x8xf32> to vector<2x8x8xf32>
    %59 = vector.extract_strided_slice %4 {offsets = [0, 16], sizes = [16, 8], strides = [1, 1]} : vector<16x32xf32> to vector<16x8xf32>
    %60 = vector.shape_cast %59 : vector<16x8xf32> to vector<2x8x8xf32>
    %cst_18 = arith.constant dense<0.000000e+00> : vector<2x8x8xf32>
    %61 = tpu.matmul %58, %60, %cst_18 {dimension_numbers = #tpu.dot_dimension_numbers<[2], [1], [1], [2], [0, 0, 0, 1, 1, 2], [0], [0]>} : vector<2x8x8xf32>, vector<2x8x8xf32>, vector<2x8x8xf32> -> vector<2x8x8xf32>
    %62 = vector.extract_strided_slice %49 {offsets = [0, 24, 0], sizes = [2, 8, 8], strides = [1, 1, 1]} : vector<2x32x8xf32> to vector<2x8x8xf32>
    %63 = vector.extract_strided_slice %4 {offsets = [0, 24], sizes = [16, 8], strides = [1, 1]} : vector<16x32xf32> to vector<16x8xf32>
    %64 = vector.shape_cast %63 : vector<16x8xf32> to vector<2x8x8xf32>
    %cst_19 = arith.constant dense<0.000000e+00> : vector<2x8x8xf32>
    %65 = tpu.matmul %62, %64, %cst_19 {dimension_numbers = #tpu.dot_dimension_numbers<[2], [1], [1], [2], [0, 0, 0, 1, 1, 2], [0], [0]>} : vector<2x8x8xf32>, vector<2x8x8xf32>, vector<2x8x8xf32> -> vector<2x8x8xf32>
    %66 = tpu.concatenate %53, %57, %61, %65 in 2 : vector<2x8x8xf32>, vector<2x8x8xf32>, vector<2x8x8xf32>, vector<2x8x8xf32> -> vector<2x8x32xf32>
    %67 = vector.shape_cast %66 : vector<2x8x32xf32> to vector<16x32xf32>
    %c0_20 = arith.constant 0 : index
    %c0_21 = arith.constant 0 : index
    %68 = vector.load %arg4[%c0_20, %c0_21] : memref<32x32xf32, #tpu.memory_space<vmem>>, vector<32x32xf32>
    %cst_22 = arith.constant dense<0.000000e+00> : vector<16x32xf32>
    %69 = tpu.matmul %67, %68, %cst_22 {dimension_numbers = #tpu.dot_dimension_numbers<[1], [0], [0], [1], [0, 0, 1, 1], [], []>} : vector<16x32xf32>, vector<32x32xf32>, vector<16x32xf32> -> vector<16x32xf32>
    %c0_23 = arith.constant 0 : index
    %c0_24 = arith.constant 0 : index
    %70 = vector.load %arg5[%c0_23, %c0_24] : memref<1x32xf32, #tpu.memory_space<vmem>>, vector<1x32xf32>
    %71 = vector.broadcast %70 : vector<1x32xf32> to vector<16x32xf32>
    %72 = arith.addf %69, %71 : vector<16x32xf32>
    %c0_25 = arith.constant 0 : index
    %c0_26 = arith.constant 0 : index
    %73 = vector.load %arg6[%c0_25, %c0_26] : memref<16x32xf32, #tpu.memory_space<vmem>>, vector<16x32xf32>
    tpu.vector_store %arg6[%c0_25, %c0_26], %72 {strides = array<i32>} : memref<16x32xf32, #tpu.memory_space<vmem>>, vector<16x32xf32>,
    return
  }
  func.func @transform_0(%arg0: i32) -> (i32, i32) {
    %c0_i32 = arith.constant 0 : i32
    %c0_i32_0 = arith.constant 0 : i32
    %c0_i32_1 = arith.constant 0 : i32
    return %c0_i32, %c0_i32_0 : i32, i32
  }
  func.func @transform_1(%arg0: i32) -> (i32, i32) {
    %c0_i32 = arith.constant 0 : i32
    %c0_i32_0 = arith.constant 0 : i32
    %c0_i32_1 = arith.constant 0 : i32
    return %c0_i32, %c0_i32_0 : i32, i32
  }
  func.func @transform_2(%arg0: i32) -> (i32, i32) {
    %c0_i32 = arith.constant 0 : i32
    %c0_i32_0 = arith.constant 0 : i32
    %c0_i32_1 = arith.constant 0 : i32
    return %c0_i32, %c0_i32_0 : i32, i32
  }
  func.func @transform_3(%arg0: i32) -> (i32, i32) {
    %c0_i32 = arith.constant 0 : i32
    %c0_i32_0 = arith.constant 0 : i32
    %c0_i32_1 = arith.constant 0 : i32
    return %c0_i32, %c0_i32_0 : i32, i32
  }
  func.func @transform_4(%arg0: i32) -> (i32, i32) {
    %c0_i32 = arith.constant 0 : i32
    %c0_i32_0 = arith.constant 0 : i32
    %c0_i32_1 = arith.constant 0 : i32
    return %c0_i32, %c0_i32_0 : i32, i32
  }
  func.func @transform_5(%arg0: i32) -> (i32, i32) {
    %c0_i32 = arith.constant 0 : i32
    %c0_i32_0 = arith.constant 0 : i32
    %c0_i32_1 = arith.constant 0 : i32
    return %c0_i32, %c0_i32_0 : i32, i32
  }
}

</mosaic_0001>

<bundles_post_ra>
// kernel: tpu_custom_call.1
= control target key start
LH: loop header
LB: loop body
LE: loop exit
PB: predicated region body
PF: predicated region fallthrough
CT: control target
= control target key end

     0   :  { %10 = vsyncpa [#allocation3], 0  ;;  %s2398_s0 = inlined_call_operand.hbm [shape: f32[16,32], index: 0, kind: input, shape index: {}]   ;;  %s2399_s1 = inlined_call_operand.hbm [shape: f32[32,128], index: 1, kind: input, shape index: {}]   ;;  %s2400_s2 = inlined_call_operand.hbm [shape: f32[32,32], index: 2, kind: input, shape index: {}]   ;;  %s2401_s3 = inlined_call_operand.hbm [shape: f32[32,32], index: 3, kind: input, shape index: {}]   ;;  %s2402_s4 = inlined_call_operand.vmem [shape: f32[1,32], index: 4, kind: input, shape index: {}]   ;;  %s2403_s5 = inlined_call_operand.hbm [shape: f32[16,32], index: 5, kind: output, shape index: {}]  }
   0x1   :  { %11 = vsyncpa [#allocation6], 0 }
   0x2   :  { %12 = vsyncpa [#allocation9], 0 }
   0x3   :  { %13 = vsyncpa [#allocation4], 0  ;;  %s2123_s18 = smov [#allocation5]   ;;  %s2124_s20 = smov [#allocation2]  }
   0x4   :  { %s31_s19 = sshll.u32 %s2123_s18, 4  ;;  %s19_s21 = sshll.u32 %s2124_s20, 4  ;;  %s32_s19 = int_to_ptr.vmem [resolvable:$true] %s31_s19  ;;  %s2170_s21 = int_to_ptr.vmem [resolvable:$true] %s19_s21 }
   0x5   :  { %s2005_s24 = scalar_lea.hbm %s2399_s1, 512 }
   0x6   :  { %p2006_p0 = scmp.ne.s32.totalorder %s2399_s1, %s2005_s24  ;;  %p2009_p1 = scmp.lt.u32.totalorder %s2005_s24, %s2399_s1 }
   0x8   :  { %p2011_p2 = pnand %p2009_p1, %p2006_p0 }
   0xa   :  { %2014 = shalt.err (!%p2011_p2)
}
   0xb   :  { %s2015_s29 = scalar_lea.vmem %s32_s19, 512  ;;  %p2020_p4 = scmp.lt.s32.totalorder %s32_s19, %s32_s19 }
   0xc   :  { %p2016_p3 = scmp.ne.s32.totalorder %s32_s19, %s2015_s29  ;;  %p2021_p5 = scmp.lt.s32.totalorder %s2015_s29, %s2015_s29 }
   0xe   :  { %p2022_p6 = por %p2021_p5, %p2020_p4 }
  0x10   :  { %p2023_p7 = pnand %p2022_p6, %p2016_p3 }
  0x12   :  { %2026 = shalt.err (!%p2023_p7)
}
  0x13   :  { %s2125_s30 = smov 128   ;;  %s2126_s6 = smov 8  }
  0x14   :  { %37 = dma.hbm_to_vmem [thread:$0]  %s2399_s1, 512, %s32_s19, [#allocation6], %s2125_s30, %s2125_s30, %s2126_s6  }
  0x15   :  { %s2027_s11 = scalar_lea.hbm %s2398_s0, 256 }
  0x16   :  { %p2028_p8 = scmp.ne.s32.totalorder %s2398_s0, %s2027_s11  ;;  %p2031_p9 = scmp.lt.u32.totalorder %s2027_s11, %s2398_s0 }
  0x18   :  { %p2033_p10 = pnand %p2031_p9, %p2028_p8 }
  0x1a   :  { %2036 = shalt.err (!%p2033_p10)
}
  0x1b   :  { %s2037_s16 = scalar_lea.vmem %s2170_s21, 256  ;;  %p2042_p12 = scmp.lt.s32.totalorder %s2170_s21, %s2170_s21 }
  0x1c   :  { %p2038_p11 = scmp.ne.s32.totalorder %s2170_s21, %s2037_s16  ;;  %p2043_p13 = scmp.lt.s32.totalorder %s2037_s16, %s2037_s16 }
  0x1e   :  { %p2044_p0 = por %p2043_p13, %p2042_p12 }
  0x20   :  { %p2045_p1 = pnand %p2044_p0, %p2038_p11 }
  0x22   :  { %2048 = shalt.err (!%p2045_p1)
}
  0x23   :  { %25 = dma.hbm_to_vmem [thread:$0]  %s2398_s0, 256, %s2170_s21, [#allocation3], %s2125_s30, %s2125_s30, %s2126_s6  }
  0x24   :  { %s2127_s18 = smov [#allocation7]   ;;  %s2128_s20 = smov [#allocation8]  }
  0x25   :  { %s43_s19 = sshll.u32 %s2127_s18, 4  ;;  %s55_s22 = sshll.u32 %s2128_s20, 4  ;;  %s44_s19 = int_to_ptr.vmem [resolvable:$true] %s43_s19  ;;  %s2207_s22 = int_to_ptr.vmem [resolvable:$true] %s55_s22 }
  0x26   :  { %s2049_s25 = scalar_lea.hbm %s2400_s2, 512 }
  0x27   :  { %p2050_p2 = scmp.ne.s32.totalorder %s2400_s2, %s2049_s25  ;;  %p2053_p3 = scmp.lt.u32.totalorder %s2049_s25, %s2400_s2 }
  0x29   :  { %p2055_p4 = pnand %p2053_p3, %p2050_p2 }
  0x2b   :  { %2058 = shalt.err (!%p2055_p4)
}
  0x2c   :  { %s2059_s0 = scalar_lea.vmem %s44_s19, 512  ;;  %p2064_p6 = scmp.lt.s32.totalorder %s44_s19, %s44_s19 }
  0x2d   :  { %p2060_p5 = scmp.ne.s32.totalorder %s44_s19, %s2059_s0  ;;  %p2065_p7 = scmp.lt.s32.totalorder %s2059_s0, %s2059_s0 }
  0x2f   :  { %p2066_p8 = por %p2065_p7, %p2064_p6 }
  0x31   :  { %p2067_p9 = pnand %p2066_p8, %p2060_p5 }
  0x33   :  { %2070 = shalt.err (!%p2067_p9)
}
  0x34   :  { %49 = dma.hbm_to_vmem [thread:$0]  %s2400_s2, 512, %s44_s19, [#allocation6], %s2125_s30, %s2125_s30, %s2126_s6  }
  0x35   :  { %s2071_s10 = scalar_lea.hbm %s2401_s3, 512 }
  0x36   :  { %p2072_p10 = scmp.ne.s32.totalorder %s2401_s3, %s2071_s10  ;;  %p2075_p11 = scmp.lt.u32.totalorder %s2071_s10, %s2401_s3 }
  0x38   :  { %p2077_p12 = pnand %p2075_p11, %p2072_p10 }
  0x3a   :  { %2080 = shalt.err (!%p2077_p12)
}
  0x3b   :  { %s2081_s15 = scalar_lea.vmem %s2207_s22, 512  ;;  %p2086_p0 = scmp.lt.s32.totalorder %s2207_s22, %s2207_s22 }
  0x3c   :  { %p2082_p13 = scmp.ne.s32.totalorder %s2207_s22, %s2081_s15  ;;  %p2087_p1 = scmp.lt.s32.totalorder %s2081_s15, %s2081_s15 }
  0x3e   :  { %p2088_p2 = por %p2087_p1, %p2086_p0 }
  0x40   :  { %p2089_p3 = pnand %p2088_p2, %p2082_p13 }
  0x42   :  { %2092 = shalt.err (!%p2089_p3)
}
  0x43   :  { %61 = dma.hbm_to_vmem [thread:$0]  %s2401_s3, 512, %s2207_s22, [#allocation9], %s2125_s30, %s2125_s30, %s2126_s6  }
  0x44   :  { %2115 = dma.done.wait [#allocation3], 256  }
  0x45   :  { %2116 = vsyncadd [#allocation3], 4294967040 }
  0x46   :  { %2117 = dma.done.wait [#allocation6], 1024  }
  0x47   :  { %2118 = vsyncadd [#allocation6], 4294966272 }
  0x48   :  { %2119 = dma.done.wait [#allocation9], 512  }
  0x49   :  { %2120 = vsyncadd [#allocation9], 4294966784  ;;  %vm82_vm0 = vcmask 261120   ;;  %v78_v0 = vld [vmem:[#allocation5] sm:$0xff]  ;;  %v79_v1 = vld [vmem:[#allocation5 + $0x8] sm:$0xff]  ;;  %v2129_v14 = vmov 0.0   ;;  %v833_v25 = vlaneseq }
  0x4a   :  { %v80_v2 = vld [vmem:[#allocation5 + $0x10] sm:$0xff]  ;;  %v1932_v3 = vpack.c.bf16 %v79_v1, %v78_v0  ;;  %v81_v4 = vld [vmem:[#allocation5 + $0x18] sm:$0xff]  ;;  %v164_v7 = vld [vmem:[#allocation7] sm:$0xff]  ;;  %vm2130_vm1 = vmmov 0   ;;  %s2131_s3 = smov 64   ;;  %s2132_s1 = smov 96  }
  0x4b   :  { %v2244_v5 = vld [vmem:[#allocation2] sm:$0xff]  ;;  %v1936_v6 = vpack.c.bf16 %v81_v4, %v80_v2  ;;  %v165_v8 = vld [vmem:[#allocation7 + $0x8] sm:$0xff]  ;;  %v167_v11 = vld [vmem:[#allocation7 + $0x18] sm:$0xff]  ;;  %s2133_s17 = smov 32   ;;  %v834_v26 = vshrl.u32 %v833_v25, 7  ;;  %v839_v27 = vand.u32 127, %v833_v25 }
  0x4c   :  { %1827 = vmatprep.mubr.msk.f32.mxu0 %vm82_vm0, %v2244_v5  ;;  %v166_v9 = vld [vmem:[#allocation7 + $0x10] sm:$0xff]  ;;  %1838 = vmatprep.mubr.msk.f32.mxu1 %vm82_vm0, %v2244_v5  ;;  %v1940_v10 = vpack.c.bf16 %v165_v8, %v164_v7  ;;  %v77_v13 = vld [vmem:[#allocation2 + $0x8] sm:$0xff]  ;;  %vm900_vm3 = vcmask 64512   ;;  %s2134_s18 = smov 120   ;;  %s2135_s19 = smov 112   ;;  %vm1619_vm7 = vcmask 130048  }
  0x4d   :  { %1933 = vmatprep.subr.bf16.mxu0 %v1932_v3  ;;  %v1944_v12 = vpack.c.bf16 %v167_v11, %v166_v9  ;;  %v844_v28 = vand.u32 7, %v834_v26  ;;  %v835_v37 = vadd.s32 8, %v834_v26  ;;  %v836_v39 = vadd.s32 16, %v834_v26  ;;  %s2136_s20 = smov 104   ;;  %s2137_s22 = smov 16  }
  0x4e   :  { %1935 = vmatpush3.bf16.msra.mxu0 %v1932_v3  ;;  %1941 = vmatprep.subr.bf16.mxu1 %v1940_v10  ;;  %v837_v41 = vadd.s32 24, %v834_v26  ;;  %s2138_s23 = smov 24   ;;  %vm1622_vm8 = vcmask 195584   ;;  %s2139_s26 = smov [#allocation10]  }
  0x4f   :  { %1937 = vmatprep.subr.bf16.mxu0 %v1936_v6  ;;  %1943 = vmatpush3.bf16.msra.mxu1 %v1940_v10  ;;  %vm888_vm2 = vcmp.ge.s32.totalorder %v839_v27, %v844_v28  ;;  %v851_v38 = vand.u32 7, %v835_v37  ;;  %v858_v40 = vand.u32 7, %v836_v39  ;;  %s1724_s27 = sshll.u32 %s2139_s26, 4  ;;  %s1725_s27 = int_to_ptr.vmem [resolvable:$true] %s1724_s27 }
  0x50   :  { %1945 = vmatprep.subr.bf16.mxu1 %v1944_v12  ;;  %v865_v47 = vand.u32 7, %v837_v41  ;;  %s2093_s28 = scalar_lea.vmem %s1725_s27, 256  ;;  %p2098_p5 = scmp.lt.s32.totalorder %s1725_s27, %s1725_s27 }
  0x51   :  { %vm889_vm4 = vcmp.ge.s32.totalorder %v839_v27, %v851_v38  ;;  %vm2313_vm5 = vcmp.ge.s32.totalorder %v839_v27, %v858_v40  ;;  %p2094_p4 = scmp.ne.s32.totalorder %s1725_s27, %s2093_s28  ;;  %p2099_p6 = scmp.lt.s32.totalorder %s2093_s28, %s2093_s28 }
  0x52   :  { %1939 = vmatpush3.bf16.msra.mxu0 %v1936_v6  ;;  %vm891_vm6 = vcmp.ge.s32.totalorder %v839_v27, %v865_v47 }
  0x53   :  { %1851 = vmatprep.subr.mxu0 %v2129_v14  ;;  %1947 = vmatpush3.bf16.msra.mxu1 %v1944_v12  ;;  %p2100_p7 = por %p2099_p6, %p2098_p5 }
  0x54   :  { %1841 = vmatprep.subr.mxu1 %v2129_v14 }
  0x55   :  { %1828 = vmatmul.mubr.msk.f32.vlgmr.msra.gmra.mrb[0].mxu0 %vm82_vm0, %v77_v13  ;;  %p2101_p8 = pnand %p2100_p7, %p2094_p4 }
  0x56   :  { %1839 = vmatmul.mubr.msk.f32.vlgmr.msra.gmra.mrb[0].mxu1 %vm82_vm0, %v77_v13  ;;  %1853 = vmatprep.mubr.msk.f32.mxu0 %vm2130_vm1, %v2129_v14 }
  0x57   :  { %1843 = vmatprep.mubr.msk.f32.mxu1 %vm2130_vm1, %v2129_v14 }
  0x5b   :  { %1852 = vmatpush3.xpose.msk.msra.mxu0 %vm82_vm0, %v2244_v5 }
  0x5c   :  { %1861 = vmatprep.subr.mxu0 %v2129_v14  ;;  %1842 = vmatpush3.xpose.msk.msra.mxu1 %vm82_vm0, %v2244_v5 }
  0x5d   :  { %1846 = vmatprep.subr.mxu1 %v2129_v14 }
 0x128   :  { %v1829_v15 = vpop.f32.mrb[0].mxu0 }
 0x129   :  { %v155_v16 = vpop.f32.mrb[1].mxu0  ;;  %v2264_v17 = vpop.f32.mrb[0].mxu1 }
 0x12a   :  { %537 = vrot.lane.b32.xlu1 %v155_v16, %s2131_s3  ;;  %389 = vrot.lane.b32.xlu0 %v155_v16, %s2132_s1  ;;  %v2267_v18 = vpop.f32.mrb[1].mxu1 }
 0x12b   :  { %1844 = vmatmul.mubr.msk.f32.vlgmr.msra.gmra.mrb[2].mxu1 %vm82_vm0, %v155_v16 }
 0x12c   :  { %1847 = vmatpush3.xpose.msk.msra.mxu1 %vm82_vm0, %v77_v13  ;;  %1848 = vmatprep.mubr.msk.f32.mxu1 %vm2130_vm1, %v2129_v14 }
 0x12d   :  { %1856 = vmatprep.subr.mxu1 %v2129_v14 }
 0x12e   :  { %611 = vrot.lane.b32.xlu1 %v1829_v15, %s2131_s3  ;;  %463 = vrot.lane.b32.xlu0 %v1829_v15, %s2132_s1 }
 0x12f   :  { %1849 = vmatmul.mubr.msk.f32.vlgmr.msra.gmra.mrb[4].mxu1 %vm82_vm0, %v1829_v15 }
 0x130   :  { %1857 = vmatpush3.xpose.msk.msra.mxu1 %vm82_vm0, %v77_v13  ;;  %1858 = vmatprep.mubr.msk.f32.mxu1 %vm2130_vm1, %v2129_v14 }
 0x131   :  { %1866 = vmatprep.subr.mxu1 %v2129_v14 }
 0x132   :  { %759 = vrot.lane.b32.xlu1 %v1829_v15, %s2133_s17  ;;  %685 = vrot.lane.b32.xlu0 %v155_v16, %s2133_s17 }
 0x19c   :  { %v538_v19 = vpop.permute.xlu1 %537  ;;  %v390_v20 = vpop.permute.xlu0 %389 }
 0x19d   :  { %1854 = vmatmul.mubr.msk.f32.vlgmr.msra.gmra.mrb[2].mxu0 %vm82_vm0, %v390_v20 }
 0x19e   :  { %1862 = vmatpush3.xpose.msk.msra.mxu0 %vm82_vm0, %v2244_v5  ;;  %1863 = vmatprep.mubr.msk.f32.mxu0 %vm2130_vm1, %v2129_v14 }
 0x19f   :  { %1871 = vmatprep.subr.mxu0 %v2129_v14 }
 0x1a0   :  { %v464_v21 = vpop.permute.xlu0 %463  ;;  %v612_v22 = vpop.permute.xlu1 %611 }
 0x1a1   :  { %1859 = vmatmul.mubr.msk.f32.vlgmr.msra.gmra.mrb[6].mxu1 %vm82_vm0, %v464_v21  ;;  %1864 = vmatmul.mubr.msk.f32.vlgmr.msra.gmra.mrb[4].mxu0 %vm82_vm0, %v538_v19 }
 0x1a2   :  { %1867 = vmatpush3.xpose.msk.msra.mxu1 %vm82_vm0, %v77_v13  ;;  %1872 = vmatpush3.xpose.msk.msra.mxu0 %vm82_vm0, %v2244_v5 }
 0x1a3   :  { %1873 = vmatprep.mubr.msk.f32.mxu0 %vm2130_vm1, %v2129_v14  ;;  %1868 = vmatprep.mubr.msk.f32.mxu1 %vm2130_vm1, %v2129_v14 }
 0x1a4   :  { %v686_v23 = vpop.permute.xlu0 %685  ;;  %1876 = vmatprep.subr.mxu1 %v2129_v14  ;;  %1881 = vmatprep.subr.mxu0 %v2129_v14  ;;  %v760_v24 = vpop.permute.xlu1 %759 }
 0x1a5   :  { %1869 = vmatmul.mubr.msk.f32.vlgmr.msra.gmra.mrb[8].mxu1 %vm82_vm0, %v612_v22  ;;  %1874 = vmatmul.mubr.msk.f32.vlgmr.msra.gmra.mrb[6].mxu0 %vm82_vm0, %v686_v23 }
 0x1a6   :  { %1877 = vmatpush3.xpose.msk.msra.mxu1 %vm82_vm0, %v77_v13  ;;  %1878 = vmatprep.mubr.msk.f32.mxu1 %vm2130_vm1, %v2129_v14 }
 0x1a7   :  { %1886 = vmatprep.subr.mxu1 %v2129_v14  ;;  %1882 = vmatpush3.msra.mxu0 %v2267_v18 }
 0x1a8   :  { %1883 = vmatprep.mubr.msk.f32.mxu0 %vm2130_vm1, %v2129_v14  ;;  %1891 = vmatprep.subr.mxu0 %v2129_v14 }
 0x1a9   :  { %1879 = vmatmul.mubr.msk.f32.vlgmr.msra.gmra.mrb[10].mxu1 %vm82_vm0, %v760_v24 }
 0x1aa   :  { %1887 = vmatpush3.msra.mxu1 %v2264_v17  ;;  %1888 = vmatprep.mubr.msk.f32.mxu1 %vm2130_vm1, %v2129_v14 }
 0x1ab   :  { %1896 = vmatprep.subr.mxu1 %v2129_v14 }
 0x1fe   :  { %v312_v29 = vpop.f32.mrb[2].mxu1 }
 0x1ff   :  { %v892_v30 = vsel %vm888_vm2, %v312_v29, -inf  ;;  %v1845_v31 = vpop.f32.mrb[3].mxu1 }
 0x200   :  { %v901_v32 = vsel %vm900_vm3, %v892_v30, -inf }
 0x201   :  { %902 = vmax.xlane.f32.xlu0 %v901_v32 }
 0x202   :  { %v385_v33 = vpop.f32.mrb[4].mxu1 }
 0x203   :  { %v896_v34 = vsel %vm888_vm2, %v385_v33, -inf  ;;  %v1850_v35 = vpop.f32.mrb[5].mxu1 }
 0x204   :  { %v913_v36 = vsel %vm900_vm3, %v896_v34, -inf }
 0x205   :  { %914 = vmax.xlane.f32.xlu1 %v913_v36 }
 0x270   :  { %v459_v42 = vpop.f32.mrb[2].mxu0 }
 0x271   :  { %v893_v43 = vsel %vm889_vm4, %v459_v42, -inf  ;;  %v1855_v44 = vpop.f32.mrb[3].mxu0 }
 0x272   :  { %v904_v45 = vsel %vm900_vm3, %v893_v43, -inf }
 0x273   :  { %905 = vmax.xlane.f32.xlu0 %v904_v45 }
 0x274   :  { %v533_v48 = vpop.f32.mrb[6].mxu1  ;;  %v607_v49 = vpop.f32.mrb[4].mxu0 }
 0x275   :  { %v897_v50 = vsel %vm889_vm4, %v533_v48, -inf  ;;  %v894_v51 = vsel %vm2313_vm5, %v607_v49, -inf  ;;  %v1860_v52 = vpop.f32.mrb[7].mxu1  ;;  %v1865_v53 = vpop.f32.mrb[5].mxu0 }
 0x276   :  { %v907_v54 = vsel %vm900_vm3, %v894_v51, -inf  ;;  %v916_v55 = vsel %vm900_vm3, %v897_v50, -inf }
 0x277   :  { %908 = vmax.xlane.f32.xlu1 %v907_v54  ;;  %917 = vmax.xlane.f32.xlu0 %v916_v55 }
 0x278   :  { %v681_v56 = vpop.f32.mrb[8].mxu1  ;;  %v755_v57 = vpop.f32.mrb[6].mxu0 }
 0x279   :  { %v898_v58 = vsel %vm2313_vm5, %v681_v56, -inf  ;;  %v895_v59 = vsel %vm891_vm6, %v755_v57, -inf  ;;  %v1870_v60 = vpop.f32.mrb[9].mxu1  ;;  %v1875_v61 = vpop.f32.mrb[7].mxu0 }
 0x27a   :  { %v910_v62 = vsel %vm900_vm3, %v895_v59, -inf  ;;  %v919_v63 = vsel %vm900_vm3, %v898_v58, -inf }
 0x27b   :  { %911 = vmax.xlane.f32.xlu1 %v910_v62  ;;  %920 = vmax.xlane.f32.xlu0 %v919_v63 }
 0x27c   :  { %v829_v0 = vpop.f32.mrb[10].mxu1 }
 0x27d   :  { %v899_v1 = vsel %vm891_vm6, %v829_v0, -inf  ;;  %v1880_v2 = vpop.f32.mrb[11].mxu1 }
 0x27e   :  { %v922_v3 = vsel %vm900_vm3, %v899_v1, -inf }
 0x27f   :  { %923 = vmax.xlane.f32.xlu0 %v922_v3 }
 0x28c   :  { %1136 = vrot.lane.b32.xlu1 %v2267_v18, %s2134_s18 }
 0x28e   :  { %v903_v6 = vpop.xlane.xlu0 %902 }
 0x28f   :  { %v925_v7 = vsub.f32 %v892_v30, %v903_v6 }
 0x290   :  { %1289 = vrot.lane.b32.xlu1 %v2267_v18, %s2135_s19 }
 0x291   :  { %v933_v9 = vmul.f32 1.442695, %v925_v7 }
 0x292   :  { %v915_v4 = vpop.xlane.xlu1 %914 }
 0x293   :  { %v929_v5 = vsub.f32 %v896_v34, %v915_v4 }
 0x294   :  { %1365 = vrot.lane.b32.xlu1 %v2264_v17, %s2135_s19 }
 0x295   :  { %1213 = vrot.lane.b32.xlu0 %v2264_v17, %s2134_s18  ;;  %v941_v8 = vmul.f32 1.442695, %v929_v5 }
 0x297   :  { %1973 = vpow2.f32 %v941_v8 }
 0x298   :  { %1975 = vpow2.f32 %v933_v9 }
 0x2a1   :  { %v1974_v10 = vpop.eup %1973 }
 0x2a2   :  { %v961_v11 = vsel %vm900_vm3, %v1974_v10, 0.0  ;;  %v2331_v12 = vpop.eup %1975 }
 0x2a3   :  { %v949_v13 = vsel %vm900_vm3, %v2331_v12, 0.0 }
 0x2b4   :  { %962 = vadd.xlane.f32.xlu0 %v961_v11 }
 0x2b8   :  { %950 = vadd.xlane.f32.xlu1 %v949_v13 }
 0x300   :  { %v906_v15 = vpop.xlane.xlu0 %905 }
 0x301   :  { %v926_v16 = vsub.f32 %v893_v43, %v906_v15 }
 0x303   :  { %v935_v19 = vmul.f32 1.442695, %v926_v16  ;;  %v1625_v16 = vld [vmem:[#allocation8] sm:$0xff] }
 0x304   :  { %v909_v20 = vpop.xlane.xlu1 %908  ;;  %v918_v21 = vpop.xlane.xlu0 %917 }
 0x305   :  { %1977 = vpow2.f32 %v935_v19  ;;  %v927_v22 = vsub.f32 %v894_v51, %v909_v20  ;;  %v930_v23 = vsub.f32 %v897_v50, %v918_v21  ;;  %v1626_v19 = vld [vmem:[#allocation8 + $0x8] sm:$0xff]  ;;  %v1627_v21 = vld [vmem:[#allocation8 + $0x10] sm:$0xff] }
 0x306   :  { %v1948_v20 = vpack.c.bf16 %v1626_v19, %v1625_v16 }
 0x307   :  { %v937_v24 = vmul.f32 1.442695, %v927_v22  ;;  %v943_v25 = vmul.f32 1.442695, %v930_v23  ;;  %v1628_v22 = vld [vmem:[#allocation8 + $0x18] sm:$0xff] }
 0x308   :  { %v912_v26 = vpop.xlane.xlu1 %911  ;;  %v921_v27 = vpop.xlane.xlu0 %920  ;;  %v1952_v23 = vpack.c.bf16 %v1628_v22, %v1627_v21 }
 0x309   :  { %1979 = vpow2.f32 %v937_v24  ;;  %v928_v28 = vsub.f32 %v895_v59, %v912_v26  ;;  %v931_v29 = vsub.f32 %v898_v58, %v921_v27 }
 0x30a   :  { %1981 = vpow2.f32 %v943_v25 }
 0x30b   :  { %v939_v30 = vmul.f32 1.442695, %v928_v28  ;;  %v945_v31 = vmul.f32 1.442695, %v931_v29 }
 0x30c   :  { %v924_v32 = vpop.xlane.xlu0 %923  ;;  %v1137_v47 = vpop.permute.xlu1 %1136 }
 0x30d   :  { %1983 = vpow2.f32 %v939_v30  ;;  %v932_v33 = vsub.f32 %v899_v1, %v924_v32 }
 0x30e   :  { %1985 = vpow2.f32 %v945_v31 }
 0x30f   :  { %v1978_v34 = vpop.eup %1977  ;;  %v947_v35 = vmul.f32 1.442695, %v932_v33 }
 0x310   :  { %v952_v36 = vsel %vm900_vm3, %v1978_v34, 0.0  ;;  %v1290_v48 = vpop.permute.xlu1 %1289  ;;  %v1214_v49 = vpop.permute.xlu0 %1213 }
 0x311   :  { %1987 = vpow2.f32 %v947_v35  ;;  %953 = vadd.xlane.f32.xlu1 %v952_v36 }
 0x313   :  { %v1980_v37 = vpop.eup %1979 }
 0x314   :  { %v1982_v38 = vpop.eup %1981  ;;  %v955_v39 = vsel %vm900_vm3, %v1980_v37, 0.0  ;;  %v1366_v50 = vpop.permute.xlu1 %1365 }
 0x315   :  { %956 = vadd.xlane.f32.xlu1 %v955_v39  ;;  %v964_v40 = vsel %vm900_vm3, %v1982_v38, 0.0 }
 0x316   :  { %965 = vadd.xlane.f32.xlu0 %v964_v40 }
 0x317   :  { %v1984_v41 = vpop.eup %1983 }
 0x318   :  { %v1986_v42 = vpop.eup %1985  ;;  %v958_v43 = vsel %vm900_vm3, %v1984_v41, 0.0 }
 0x319   :  { %959 = vadd.xlane.f32.xlu1 %v958_v43  ;;  %v967_v44 = vsel %vm900_vm3, %v1986_v42, 0.0 }
 0x31a   :  { %968 = vadd.xlane.f32.xlu0 %v967_v44 }
 0x31b   :  { %v2340_v45 = vpop.eup %1987 }
 0x31c   :  { %v970_v46 = vsel %vm900_vm3, %v2340_v45, 0.0 }
 0x31e   :  { %971 = vadd.xlane.f32.xlu0 %v970_v46 }
 0x32a   :  { %1517 = vrot.lane.b32.xlu1 %v2264_v17, %s2136_s20 }
 0x334   :  { %1441 = vrot.lane.b32.xlu0 %v2267_v18, %s2136_s20 }
 0x341   :  { %v963_v51 = vpop.xlane.xlu0 %962 }
 0x342   :  { %1989 = vrcp.f32 %v963_v51 }
 0x345   :  { %v951_v52 = vpop.xlane.xlu1 %950 }
 0x346   :  { %1991 = vrcp.f32 %v951_v52 }
 0x34c   :  { %v1990_v53 = vpop.eup %1989 }
 0x34d   :  { %v985_v54 = vmul.f32 %v1990_v53, %v1974_v10 }
 0x34f   :  { %1889 = vmatmul.mubr.msk.f32.vlgmr.msra.gmra.mrb[12].mxu1 %vm900_vm3, %v985_v54 }
 0x350   :  { %v1992_v55 = vpop.eup %1991  ;;  %1897 = vmatpush3.msra.mxu1 %v1214_v49  ;;  %1898 = vmatprep.mubr.msk.f32.mxu1 %vm2130_vm1, %v2129_v14 }
 0x351   :  { %v981_v17 = vmul.f32 %v1992_v55, %v2331_v12  ;;  %1906 = vmatprep.subr.mxu1 %v2129_v14 }
 0x353   :  { %1884 = vmatmul.mubr.msk.f32.vlgmr.msra.gmra.mrb[8].mxu0 %vm900_vm3, %v981_v17 }
 0x354   :  { %1892 = vmatpush3.msra.mxu0 %v1137_v47  ;;  %1893 = vmatprep.mubr.msk.f32.mxu0 %vm2130_vm1, %v2129_v14  ;;  %v1766_v47 = vld [vmem:[%s2402_s4] ss:$0 sm:$0xff] }
 0x355   :  { %1901 = vmatprep.subr.mxu0 %v2129_v14 }
 0x39e   :  { %v954_v18 = vpop.xlane.xlu1 %953 }
 0x39f   :  { %1993 = vrcp.f32 %v954_v18 }
 0x3a2   :  { %v957_v56 = vpop.xlane.xlu1 %956 }
 0x3a3   :  { %1995 = vrcp.f32 %v957_v56  ;;  %v966_v57 = vpop.xlane.xlu0 %965 }
 0x3a4   :  { %1997 = vrcp.f32 %v966_v57 }
 0x3a6   :  { %v960_v58 = vpop.xlane.xlu1 %959 }
 0x3a7   :  { %1999 = vrcp.f32 %v960_v58  ;;  %v969_v59 = vpop.xlane.xlu0 %968 }
 0x3a8   :  { %2001 = vrcp.f32 %v969_v59 }
 0x3a9   :  { %v1994_v60 = vpop.eup %1993 }
 0x3aa   :  { %v982_v61 = vmul.f32 %v1994_v60, %v1978_v34  ;;  %v1518_v8 = vpop.permute.xlu1 %1517 }
 0x3ab   :  { %v972_v62 = vpop.xlane.xlu0 %971 }
 0x3ac   :  { %2003 = vrcp.f32 %v972_v62  ;;  %1894 = vmatmul.mubr.msk.f32.vlgmr.msra.gmra.mrb[10].mxu0 %vm900_vm3, %v982_v61 }
 0x3ad   :  { %v1996_v63 = vpop.eup %1995  ;;  %1902 = vmatpush3.msra.mxu0 %v1290_v48  ;;  %1903 = vmatprep.mubr.msk.f32.mxu0 %vm2130_vm1, %v2129_v14 }
 0x3ae   :  { %v1998_v0 = vpop.eup %1997  ;;  %v983_v1 = vmul.f32 %v1996_v63, %v1980_v37  ;;  %1911 = vmatprep.subr.mxu0 %v2129_v14 }
 0x3af   :  { %v986_v2 = vmul.f32 %v1998_v0, %v1982_v38  ;;  %v1442_v3 = vpop.permute.xlu0 %1441 }
 0x3b0   :  { %1904 = vmatmul.mubr.msk.f32.vlgmr.msra.gmra.mrb[12].mxu0 %vm900_vm3, %v983_v1 }
 0x3b1   :  { %v2000_v4 = vpop.eup %1999  ;;  %1899 = vmatmul.mubr.msk.f32.vlgmr.msra.gmra.mrb[14].mxu1 %vm900_vm3, %v986_v2  ;;  %1912 = vmatpush3.msra.mxu0 %v1442_v3 }
 0x3b2   :  { %v2002_v5 = vpop.eup %2001  ;;  %v984_v6 = vmul.f32 %v2000_v4, %v1984_v41  ;;  %1907 = vmatpush3.msra.mxu1 %v1366_v50  ;;  %1908 = vmatprep.mubr.msk.f32.mxu1 %vm2130_vm1, %v2129_v14 }
 0x3b3   :  { %v987_v7 = vmul.f32 %v2002_v5, %v1986_v42  ;;  %1913 = vmatprep.mubr.msk.f32.mxu0 %vm2130_vm1, %v2129_v14  ;;  %1916 = vmatprep.subr.mxu1 %v2129_v14 }
 0x3b4   :  { %1914 = vmatmul.mubr.msk.f32.vlgmr.msra.gmra.mrb[14].mxu0 %vm900_vm3, %v984_v6  ;;  %1949 = vmatprep.subr.bf16.mxu0 %v1948_v20 }
 0x3b5   :  { %1909 = vmatmul.mubr.msk.f32.vlgmr.msra.gmra.mrb[16].mxu1 %vm900_vm3, %v987_v7  ;;  %1951 = vmatpush3.bf16.msra.mxu0 %v1948_v20 }
 0x3b6   :  { %v2004_v9 = vpop.eup %2003  ;;  %1917 = vmatpush3.msra.mxu1 %v1518_v8  ;;  %1918 = vmatprep.mubr.msk.f32.mxu1 %vm2130_vm1, %v2129_v14 }
 0x3b7   :  { %v988_v10 = vmul.f32 %v2004_v9, %v2340_v45  ;;  %1953 = vmatprep.subr.bf16.mxu0 %v1952_v23 }
 0x3b9   :  { %1919 = vmatmul.mubr.msk.f32.vlgmr.msra.gmra.mrb[18].mxu1 %vm900_vm3, %v988_v10  ;;  %1955 = vmatpush3.bf16.msra.mxu0 %v1952_v23 }
 0x422   :  { %v1131_v11 = vpop.f32.mrb[12].mxu1 }
 0x423   :  { %v1890_v12 = vpop.f32.mrb[13].mxu1 }
 0x426   :  { %v1058_v13 = vpop.f32.mrb[8].mxu0 }
 0x427   :  { %v1885_v15 = vpop.f32.mrb[9].mxu0 }
 0x47f   :  { %v1208_v24 = vpop.f32.mrb[10].mxu0 }
 0x480   :  { %v1895_v14 = vpop.f32.mrb[11].mxu0  ;;  %1595 = vrot.lane.b32.xlu0 %v1208_v24, %s2126_s6 }
 0x483   :  { %v1361_v25 = vpop.f32.mrb[12].mxu0 }
 0x484   :  { %v1285_v26 = vpop.f32.mrb[14].mxu1  ;;  %v1905_v27 = vpop.f32.mrb[13].mxu0  ;;  %1603 = vrot.lane.b32.xlu0 %v1361_v25, %s2137_s22 }
 0x485   :  { %1597 = vrot.lane.b32.xlu1 %v1285_v26, %s2126_s6  ;;  %v1900_v28 = vpop.f32.mrb[15].mxu1 }
 0x487   :  { %v1513_v29 = vpop.f32.mrb[14].mxu0 }
 0x488   :  { %v1437_v30 = vpop.f32.mrb[16].mxu1  ;;  %1611 = vrot.lane.b32.xlu0 %v1513_v29, %s2138_s23  ;;  %v1915_v31 = vpop.f32.mrb[15].mxu0 }
 0x489   :  { %1605 = vrot.lane.b32.xlu1 %v1437_v30, %s2137_s22  ;;  %v1910_v32 = vpop.f32.mrb[17].mxu1 }
 0x48c   :  { %v1589_v33 = vpop.f32.mrb[18].mxu1 }
 0x48d   :  { %1613 = vrot.lane.b32.xlu1 %v1589_v33, %s2138_s23  ;;  %v1920_v34 = vpop.f32.mrb[19].mxu1 }
 0x4f2   :  { %v1596_v35 = vpop.permute.xlu0 %1595 }
 0x4f3   :  { %v1617_v38 = vsel %vm900_vm3, %v1058_v13, %v1596_v35 }
 0x4f6   :  { %v1604_v36 = vpop.permute.xlu0 %1603 }
 0x4f7   :  { %v1598_v37 = vpop.permute.xlu1 %1597  ;;  %v1620_v39 = vsel %vm1619_vm7, %v1617_v38, %v1604_v36 }
 0x4f8   :  { %v1618_v43 = vsel %vm900_vm3, %v1131_v11, %v1598_v37 }
 0x4fa   :  { %v1612_v40 = vpop.permute.xlu0 %1611 }
 0x4fb   :  { %v1623_v41 = vsel %vm1622_vm8, %v1620_v39, %v1612_v40  ;;  %v1606_v42 = vpop.permute.xlu1 %1605 }
 0x4fc   :  { %1929 = vmatprep.mubr.msk.f32.mxu0 %vm82_vm0, %v1623_v41  ;;  %v1621_v44 = vsel %vm1619_vm7, %v1618_v43, %v1606_v42 }
 0x4ff   :  { %v1614_v45 = vpop.permute.xlu1 %1613 }
 0x500   :  { %v1624_v46 = vsel %vm1622_vm8, %v1621_v44, %v1614_v45 }
 0x501   :  { %1930 = vmatmul.mubr.msk.f32.vlgmr.msra.gmra.mrb[16].mxu0 %vm82_vm0, %v1624_v46 }
 0x5d4   :  { %v1931_v48 = vpop.f32.mrb[16].mxu0 }
 0x5d5   :  { %v1714_v49 = vadd.f32 %v1931_v48, %v1766_v47  ;;  %v1708_v50 = vpop.f32.mrb[17].mxu0 }
 0x5d6   :  { %v1709_v51 = vadd.f32 %v1766_v47, %v1708_v50 }
 0x5d7   :  { %1718 = vst.msk [vmem:[#allocation10 + $0x8] sm:$0xff] %vm82_vm0, %v1714_v49 }
 0x5d8   :  { %1717 = vst.msk [vmem:[#allocation10] sm:$0xff] %vm82_vm0, %v1709_v51 }
 0x5d9   :  { %2104 = shalt.err (!%p2101_p8)
}
 0x5da   :  { %s2105_s0 = scalar_lea.hbm %s2403_s5, 256 }
 0x5db   :  { %p2106_p9 = scmp.ne.s32.totalorder %s2403_s5, %s2105_s0  ;;  %p2109_p10 = scmp.lt.u32.totalorder %s2105_s0, %s2403_s5 }
 0x5dd   :  { %p2111_p11 = pnand %p2109_p10, %p2106_p9 }
 0x5df   :  { %2114 = shalt.err (!%p2111_p11)
}
 0x5e0   :  { %1730 = dma.vmem_to_hbm [thread:$0]  %s1725_s27, 256, %s2403_s5, [#allocation4], %s2125_s30, %s2125_s30, %s2126_s6  }
 0x5e1   :  { %2121 = dma.done.wait [#allocation4], 256  }
 0x5e2   :  { %2122 = vsyncadd [#allocation4], 4294967040 }
 0x5e3   :  { %1734 = vsyncpa [#allocation3], 1 }
 0x5e4   :  { %1735 = vsyncpa [#allocation6], 1 }
 0x5e5   :  { %1736 = vsyncpa [#allocation9], 1 }
 0x5e6   :  { %1737 = vsyncpa [#allocation4], 1 }

</bundles_post_ra>
